<compile_context>
chip_gen: v6e
topology: v6e:2x2x1
jax: 0.10.0
libtpu: 0.0.40
codegen_flags: <defaults>
</compile_context>

<pallas_src>
import math

import jax
import jax.numpy as jnp
from jax.experimental import pallas as pl
from jax.experimental.pallas import tpu as pltpu


def _round_up(x, m):
    return ((x + m - 1) // m) * m


def _sublane(dtype):
    # dtype-native sublane multiple: 8 for f32, 16 for bf16, 32 for int8/fp8.
    return max(8, 32 // jnp.dtype(dtype).itemsize)


def _spec(shape, index_map, buffers=None):
    """BlockSpec with an optional explicit buffer count (fallback if unsupported)."""
    if buffers is None or not hasattr(pl, "Buffered"):
        return pl.BlockSpec(shape, index_map)
    try:
        return pl.BlockSpec(shape, index_map, pipeline_mode=pl.Buffered(buffers))
    except TypeError:
        return pl.BlockSpec(shape, index_map)


def _lm_head_kernel(x_ref, w1_ref, nrm_ref, w2_ref, b2_ref, o_ref, h_ref):
    j = pl.program_id(1)

    # ---- stage 1: dense -> gelu -> LayerNorm, once per row tile (vocab axis is
    #      innermost + "arbitrary", so the h scratch persists across j) ----
    @pl.when(j == 0)
    def _():
        nrm = nrm_ref[...].astype(jnp.float32)  # rows: b1 / gamma / beta
        h = jnp.dot(x_ref[...], w1_ref[...], preferred_element_type=jnp.float32)
        h = h + nrm[0:1, :]

        # gelu (tanh approximation, matches reference `gelu`)
        c = math.sqrt(2.0 / math.pi)
        h = 0.5 * h * (1.0 + jnp.tanh(c * (h + 0.044715 * h * h * h)))

        # LayerNorm (TF style: eps inside sqrt, biased variance over last dim)
        u = jnp.mean(h, axis=-1, keepdims=True)
        s = jnp.mean((h - u) * (h - u), axis=-1, keepdims=True)
        h = (h - u) / jnp.sqrt(s + 1e-12)
        h = nrm[1:2, :] * h + nrm[2:3, :]

        h_ref[...] = h.astype(h_ref.dtype)

    # ---- stage 2: logits[:, j-slab] = h @ W2[:, j-slab] + b2[j-slab] ----
    logits = jnp.dot(h_ref[...], w2_ref[...], preferred_element_type=jnp.float32)
    o_ref[...] = (logits + b2_ref[...].astype(jnp.float32)).astype(o_ref.dtype)


def prepare_head_params(w1, b1, gamma, beta, w2, b2, *, tn=1024, proj_dtype=None):
    """One-time packing of the head parameters (do at init, NOT per forward).

    * coalesces b1/gamma/beta into one (3, H) operand (one DMA instead of three),
    * pads the vocab dimension once to a multiple of the lane-dense slab `tn`,
    * optionally casts the decoder weight to `proj_dtype` (e.g. bf16) so the
      dominant stage-2 matmul runs the MXU in bf16 with f32 accumulation.
    """
    H, V = w2.shape
    tn_eff = min(_round_up(tn, 128), _round_up(V, 128))
    V_pad = _round_up(V, tn_eff)

    w2_p = w2 if proj_dtype is None else w2.astype(proj_dtype)
    b2_p = b2
    if V_pad != V:
        w2_p = jnp.pad(w2_p, ((0, 0), (0, V_pad - V)))
        b2_p = jnp.pad(b2_p, ((0, V_pad - V),))

    norm = jnp.stack([b1, gamma, beta], axis=0)  # (3, H)
    return {
        "w1": w1,
        "norm": norm,
        "w2": w2_p,
        "b2": b2_p.reshape(1, V_pad),
        "vocab_size": V,
        "tn": tn_eff,
    }


def bert_lm_prediction_head(x, params, *, tm=1024, w2_buffers=2):
    """x: [B, S, H] -> logits [B, S, V] using params from prepare_head_params.

    tm: row (token) tile -- clamped to the problem, auto-shrunk to the device VMEM
        budget, and split so at least two row tiles exist (v7x 2-TC sharding).
    w2_buffers: pipeline depth for the streamed W2 slab (3 can help on v5e).
    """
    w1, norm, w2, b2 = params["w1"], params["norm"], params["w2"], params["b2"]
    V, tn_eff = params["vocab_size"], params["tn"]
    B, S, H = x.shape
    V_pad = w2.shape[1]
    M = B * S

    act = jnp.dtype(x.dtype).itemsize
    w1sz = jnp.dtype(w1.dtype).itemsize
    psz = jnp.dtype(w2.dtype).itemsize
    b2sz = jnp.dtype(b2.dtype).itemsize
    sub = _sublane(x.dtype)
    nbuf_w2 = max(1, int(w2_buffers))

    # Row tile: big by default (arithmetic intensity of the projection ~ tm), aligned
    # to the dtype-native sublane multiple, and >= 2 tiles when possible so the
    # "parallel" axis can shard across v7x's two TensorCores.
    M_al = _round_up(M, sub)
    tm_eff = min(_round_up(tm, sub), M_al)
    if tm_eff == M_al and M_al >= 2 * sub:
        tm_eff = _round_up((M_al + 1) // 2, sub)

    # Device-aware VMEM budget (v5e/v6e: 128 MiB; v7x: 64 MiB per core).
    try:
        vmem_cap = int(pltpu.get_tpu_info().vmem_capacity_bytes)
    except Exception:  # pragma: no cover - conservative fallback
        vmem_cap = 64 * 1024 * 1024
    budget = int(0.85 * vmem_cap)

    def vmem_estimate(tm_e):
        return (
            tm_e * H * act                      # x row tile (single buffered)
            + H * H * w1sz                      # W1 (single buffered)
            + 8 * H * act                       # fused b1/gamma/beta (sublane-padded)
            + max(2, nbuf_w2) * H * tn_eff * psz  # streamed W2 slabs
            + 2 * tn_eff * b2sz                 # b2 slabs
            + 2 * tm_e * tn_eff * act           # output tiles
            + tm_e * H * psz                    # persistent h scratch
        )

    while vmem_estimate(tm_eff) > budget and tm_eff > 2 * sub:
        tm_eff = max(sub, _round_up(tm_eff // 2, sub))

    M_pad = _round_up(M, tm_eff)
    grid_m = M_pad // tm_eff
    grid_v = V_pad // tn_eff

    x2 = x.reshape(M, H)
    if M_pad != M:
        x2 = jnp.pad(x2, ((0, M_pad - M), (0, 0)))

    # Advisory cost hint for XLA's scheduler (per-dtype byte accounting).
    cost = pl.CostEstimate(
        flops=int(2 * M_pad * H * H + 2 * M_pad * H * V_pad),
        transcendentals=int(M_pad * H),
        bytes_accessed=int(
            M_pad * H * act + H * H * w1sz + 3 * H * act
            + grid_m * H * V_pad * psz + grid_m * V_pad * b2sz
            + M_pad * V_pad * act
        ),
    )

    vmem_limit = min(max(int(1.25 * vmem_estimate(tm_eff)) + (4 << 20), 32 << 20),
                     budget)

    out = pl.pallas_call(
        _lm_head_kernel,
        out_shape=jax.ShapeDtypeStruct((M_pad, V_pad), x.dtype),
        grid_spec=pltpu.PrefetchScalarGridSpec(
            num_scalar_prefetch=0,
            grid=(grid_m, grid_v),
            in_specs=[
                _spec((tm_eff, H), lambda i, j: (i, 0), buffers=1),   # x row tile
                _spec((H, H), lambda i, j: (0, 0), buffers=1),        # W1 (full)
                _spec((3, H), lambda i, j: (0, 0), buffers=1),        # b1/gamma/beta
                _spec((H, tn_eff), lambda i, j: (0, j),
                      buffers=None if nbuf_w2 == 2 else nbuf_w2),     # W2 vocab slab
                pl.BlockSpec((1, tn_eff), lambda i, j: (0, j)),       # b2 vocab slab
            ],
            out_specs=pl.BlockSpec((tm_eff, tn_eff), lambda i, j: (i, j)),
            scratch_shapes=[pltpu.VMEM((tm_eff, H), w2.dtype)],       # persistent h
        ),
        compiler_params=pltpu.CompilerParams(
            dimension_semantics=("parallel", "arbitrary"),
            vmem_limit_bytes=int(vmem_limit),
        ),
        cost_estimate=cost,
    )(x2, w1, norm, w2, b2)

    # Slice off row/vocab padding before anything downstream (softmax/loss).
    return out[:M, :V].reshape(B, S, V)


def _reference(x, w1, b1, gamma, beta, w2, b2):
    h = jnp.einsum("bsh,hk->bsk", x, w1) + b1
    c = math.sqrt(2.0 / math.pi)
    h = 0.5 * h * (1.0 + jnp.tanh(c * (h + 0.044715 * h ** 3)))
    u = jnp.mean(h, axis=-1, keepdims=True)
    s = jnp.mean((h - u) ** 2, axis=-1, keepdims=True)
    h = (h - u) / jnp.sqrt(s + 1e-12)
    h = gamma * h + beta
    return jnp.einsum("bsh,hv->bsv", h, w2) + b2


if __name__ == "__main__":
    # Small, forward-implied shapes: batch=2, seq=8, hidden=32, vocab=128
    B, S, H, V = 2, 8, 32, 128

    key = jax.random.PRNGKey(0)
    kx, kw1, kb1, kw2, kb2 = jax.random.split(key, 5)

    x = jax.random.normal(kx, (B, S, H), dtype=jnp.float32)

    # transform.dense: nn.Linear(H, H) -> stored as [in, out]
    w1 = 0.02 * jax.random.normal(kw1, (H, H), dtype=jnp.float32)
    b1 = 0.02 * jax.random.normal(kb1, (H,), dtype=jnp.float32)
    # LayerNorm: weight=ones, bias=zeros (as in __init__)
    gamma = jnp.ones((H,), dtype=jnp.float32)
    beta = jnp.zeros((H,), dtype=jnp.float32)
    # decoder: nn.Linear(H, V) -> stored as [in, out]
    w2 = 0.02 * jax.random.normal(kw2, (H, V), dtype=jnp.float32)
    b2 = 0.02 * jax.random.normal(kb2, (V,), dtype=jnp.float32)

    ref = _reference(x, w1, b1, gamma, beta, w2, b2)

    # Exact (f32) path.
    params = prepare_head_params(w1, b1, gamma, beta, w2, b2, tn=1024)
    out = jax.block_until_ready(bert_lm_prediction_head(x, params))
    assert out.shape == (B, S, V)
    assert jnp.allclose(out, ref, atol=1e-5, rtol=1e-5), "mismatch vs reference (f32)"

    # bf16-projection path (review item: halve W2 HBM bytes / bf16 MXU), looser check.
    params_bf16 = prepare_head_params(w1, b1, gamma, beta, w2, b2, tn=1024,
                                      proj_dtype=jnp.bfloat16)
    out_bf16 = jax.block_until_ready(
        bert_lm_prediction_head(x, params_bf16, w2_buffers=3))
    assert out_bf16.shape == (B, S, V)
    assert jnp.allclose(out_bf16, ref, atol=3e-2, rtol=3e-2), "mismatch (bf16 proj)"

    print("KERNEL_OK")
</pallas_src>

<mosaic_0001>
module attributes {stable_mosaic.version = 11 : i64} {
  func.func @_lm_head_kernel(%arg0: i32, %arg1: i32, %arg2: memref<8x32xf32, #tpu.memory_space<vmem>>, %arg3: memref<32x32xf32, #tpu.memory_space<vmem>>, %arg4: memref<3x32xf32, #tpu.memory_space<vmem>>, %arg5: memref<32x128xf32, #tpu.memory_space<vmem>>, %arg6: memref<1x128xf32, #tpu.memory_space<vmem>>, %arg7: memref<8x128xf32, #tpu.memory_space<vmem>>, %arg8: memref<8x32xf32, #tpu.memory_space<vmem>>) attributes {dimension_semantics = [#tpu.dimension_semantics<parallel>, #tpu.dimension_semantics<arbitrary>], iteration_bounds = array<i64: 2, 1>, scalar_prefetch = 0 : i64, scratch_operands = 1 : i64, tpu.core_type = #tpu.core_type<tc>, window_params = [{pipeline_mode = #tpu.pipeline_mode<synchronous>, transform_indices = @transform_0, window_bounds = array<i64: 8, 32>}, {pipeline_mode = #tpu.pipeline_mode<synchronous>, transform_indices = @transform_1, window_bounds = array<i64: 32, 32>}, {pipeline_mode = #tpu.pipeline_mode<synchronous>, transform_indices = @transform_2, window_bounds = array<i64: 3, 32>}, {transform_indices = @transform_3, window_bounds = array<i64: 32, 128>}, {transform_indices = @transform_4, window_bounds = array<i64: 1, 128>}, {transform_indices = @transform_5, window_bounds = array<i64: 8, 128>}]} {
    %c0_i32 = arith.constant 0 : i32
    %0 = arith.cmpi eq, %arg1, %c0_i32 : i32
    %1 = arith.extui %0 : i1 to i32
    %c0_i32_0 = arith.constant 0 : i32
    %2 = arith.cmpi ne, %1, %c0_i32_0 : i32
    scf.if %2 {
      %c0_8 = arith.constant 0 : index
      %c0_9 = arith.constant 0 : index
      %10 = vector.load %arg4[%c0_8, %c0_9] : memref<3x32xf32, #tpu.memory_space<vmem>>, vector<3x32xf32>
      %c0_10 = arith.constant 0 : index
      %c0_11 = arith.constant 0 : index
      %11 = vector.load %arg2[%c0_10, %c0_11] : memref<8x32xf32, #tpu.memory_space<vmem>>, vector<8x32xf32>
      %c0_12 = arith.constant 0 : index
      %c0_13 = arith.constant 0 : index
      %12 = vector.load %arg3[%c0_12, %c0_13] : memref<32x32xf32, #tpu.memory_space<vmem>>, vector<32x32xf32>
      %cst_14 = arith.constant dense<0.000000e+00> : vector<8x32xf32>
      %13 = tpu.matmul %11, %12, %cst_14 {dimension_numbers = #tpu.dot_dimension_numbers<[1], [0], [0], [1], [0, 0, 1, 1], [], []>} : vector<8x32xf32>, vector<32x32xf32>, vector<8x32xf32> -> vector<8x32xf32>
      %14 = vector.extract_strided_slice %10 {offsets = [0, 0], sizes = [1, 32], strides = [1, 1]} : vector<3x32xf32> to vector<1x32xf32>
      %15 = vector.broadcast %14 : vector<1x32xf32> to vector<8x32xf32>
      %16 = arith.addf %13, %15 : vector<8x32xf32>
      %cst_15 = arith.constant 5.000000e-01 : f32
      %17 = vector.broadcast %cst_15 : f32 to vector<8x32xf32>
      %18 = arith.mulf %17, %16 : vector<8x32xf32>
      %cst_16 = arith.constant 4.471500e-02 : f32
      %19 = vector.broadcast %cst_16 : f32 to vector<8x32xf32>
      %20 = arith.mulf %19, %16 : vector<8x32xf32>
      %21 = arith.mulf %20, %16 : vector<8x32xf32>
      %22 = arith.mulf %21, %16 : vector<8x32xf32>
      %23 = arith.addf %16, %22 : vector<8x32xf32>
      %cst_17 = arith.constant 0.797884583 : f32
      %24 = vector.broadcast %cst_17 : f32 to vector<8x32xf32>
      %25 = arith.mulf %24, %23 : vector<8x32xf32>
      %26 = math.tanh %25 : vector<8x32xf32>
      %cst_18 = arith.constant 1.000000e+00 : f32
      %27 = vector.broadcast %cst_18 : f32 to vector<8x32xf32>
      %28 = arith.addf %27, %26 : vector<8x32xf32>
      %29 = arith.mulf %18, %28 : vector<8x32xf32>
      %cst_19 = arith.constant dense<0.000000e+00> : vector<8xf32>
      %30 = vector.multi_reduction <add>, %29, %cst_19 [1] : vector<8x32xf32> to vector<8xf32>
      %31 = vector.shape_cast %30 : vector<8xf32> to vector<8x1xf32>
      %cst_20 = arith.constant 3.200000e+01 : f32
      %32 = vector.broadcast %cst_20 : f32 to vector<8x1xf32>
      %33 = arith.divf %31, %32 : vector<8x1xf32>
      %34 = vector.broadcast %33 : vector<8x1xf32> to vector<8x32xf32>
      %35 = arith.subf %29, %34 : vector<8x32xf32>
      %36 = vector.broadcast %33 : vector<8x1xf32> to vector<8x32xf32>
      %37 = arith.subf %29, %36 : vector<8x32xf32>
      %38 = arith.mulf %35, %37 : vector<8x32xf32>
      %cst_21 = arith.constant dense<0.000000e+00> : vector<8xf32>
      %39 = vector.multi_reduction <add>, %38, %cst_21 [1] : vector<8x32xf32> to vector<8xf32>
      %40 = vector.shape_cast %39 : vector<8xf32> to vector<8x1xf32>
      %cst_22 = arith.constant 3.200000e+01 : f32
      %41 = vector.broadcast %cst_22 : f32 to vector<8x1xf32>
      %42 = arith.divf %40, %41 : vector<8x1xf32>
      %43 = vector.broadcast %33 : vector<8x1xf32> to vector<8x32xf32>
      %44 = arith.subf %29, %43 : vector<8x32xf32>
      %cst_23 = arith.constant 9.99999996E-13 : f32
      %45 = vector.broadcast %cst_23 : f32 to vector<8x1xf32>
      %46 = arith.addf %42, %45 : vector<8x1xf32>
      %47 = math.sqrt %46 : vector<8x1xf32>
      %48 = vector.broadcast %47 : vector<8x1xf32> to vector<8x32xf32>
      %49 = arith.divf %44, %48 : vector<8x32xf32>
      %50 = vector.extract_strided_slice %10 {offsets = [1, 0], sizes = [1, 32], strides = [1, 1]} : vector<3x32xf32> to vector<1x32xf32>
      %51 = vector.broadcast %50 : vector<1x32xf32> to vector<8x32xf32>
      %52 = arith.mulf %51, %49 : vector<8x32xf32>
      %53 = vector.extract_strided_slice %10 {offsets = [2, 0], sizes = [1, 32], strides = [1, 1]} : vector<3x32xf32> to vector<1x32xf32>
      %54 = vector.broadcast %53 : vector<1x32xf32> to vector<8x32xf32>
      %55 = arith.addf %52, %54 : vector<8x32xf32>
      %c0_24 = arith.constant 0 : index
      %c0_25 = arith.constant 0 : index
      %56 = vector.load %arg8[%c0_24, %c0_25] : memref<8x32xf32, #tpu.memory_space<vmem>>, vector<8x32xf32>
      tpu.vector_store %arg8[%c0_24, %c0_25], %55 {strides = array<i32>} : memref<8x32xf32, #tpu.memory_space<vmem>>, vector<8x32xf32>,
    } else {
    }
    %c0 = arith.constant 0 : index
    %c0_1 = arith.constant 0 : index
    %3 = vector.load %arg8[%c0, %c0_1] : memref<8x32xf32, #tpu.memory_space<vmem>>, vector<8x32xf32>
    %c0_2 = arith.constant 0 : index
    %c0_3 = arith.constant 0 : index
    %4 = vector.load %arg5[%c0_2, %c0_3] : memref<32x128xf32, #tpu.memory_space<vmem>>, vector<32x128xf32>
    %cst = arith.constant dense<0.000000e+00> : vector<8x128xf32>
    %5 = tpu.matmul %3, %4, %cst {dimension_numbers = #tpu.dot_dimension_numbers<[1], [0], [0], [1], [0, 0, 1, 1], [], []>} : vector<8x32xf32>, vector<32x128xf32>, vector<8x128xf32> -> vector<8x128xf32>
    %c0_4 = arith.constant 0 : index
    %c0_5 = arith.constant 0 : index
    %6 = vector.load %arg6[%c0_4, %c0_5] : memref<1x128xf32, #tpu.memory_space<vmem>>, vector<1x128xf32>
    %7 = vector.broadcast %6 : vector<1x128xf32> to vector<8x128xf32>
    %8 = arith.addf %5, %7 : vector<8x128xf32>
    %c0_6 = arith.constant 0 : index
    %c0_7 = arith.constant 0 : index
    %9 = vector.load %arg7[%c0_6, %c0_7] : memref<8x128xf32, #tpu.memory_space<vmem>>, vector<8x128xf32>
    tpu.vector_store %arg7[%c0_6, %c0_7], %8 {strides = array<i32>} : memref<8x128xf32, #tpu.memory_space<vmem>>, vector<8x128xf32>,
    return
  }
  func.func @transform_0(%arg0: i32, %arg1: i32) -> (i32, i32) {
    %c0_i32 = arith.constant 0 : i32
    %c0_i32_0 = arith.constant 0 : i32
    return %arg0, %c0_i32 : i32, i32
  }
  func.func @transform_1(%arg0: i32, %arg1: i32) -> (i32, i32) {
    %c0_i32 = arith.constant 0 : i32
    %c0_i32_0 = arith.constant 0 : i32
    %c0_i32_1 = arith.constant 0 : i32
    return %c0_i32, %c0_i32_0 : i32, i32
  }
  func.func @transform_2(%arg0: i32, %arg1: i32) -> (i32, i32) {
    %c0_i32 = arith.constant 0 : i32
    %c0_i32_0 = arith.constant 0 : i32
    %c0_i32_1 = arith.constant 0 : i32
    return %c0_i32, %c0_i32_0 : i32, i32
  }
  func.func @transform_3(%arg0: i32, %arg1: i32) -> (i32, i32) {
    %c0_i32 = arith.constant 0 : i32
    %c0_i32_0 = arith.constant 0 : i32
    return %c0_i32, %arg1 : i32, i32
  }
  func.func @transform_4(%arg0: i32, %arg1: i32) -> (i32, i32) {
    %c0_i32 = arith.constant 0 : i32
    %c0_i32_0 = arith.constant 0 : i32
    return %c0_i32, %arg1 : i32, i32
  }
  func.func @transform_5(%arg0: i32, %arg1: i32) -> (i32, i32) {
    %c0_i32 = arith.constant 0 : i32
    return %arg0, %arg1 : i32, i32
  }
}

</mosaic_0001>

<bundles_post_ra>
// kernel: tpu_custom_call.1
= control target key start
LH: loop header
LB: loop body
LE: loop exit
PB: predicated region body
PF: predicated region fallthrough
CT: control target
= control target key end

     0   :  { %s1238_s0 = inlined_call_operand.hbm [shape: f32[16,32], index: 0, kind: input, shape index: {}]   ;;  %s1239_s1 = inlined_call_operand.hbm [shape: f32[32,32], index: 1, kind: input, shape index: {}]   ;;  %s1240_s2 = inlined_call_operand.hbm [shape: f32[3,32], index: 2, kind: input, shape index: {}]   ;;  %s1241_s3 = inlined_call_operand.hbm [shape: f32[32,128], index: 3, kind: input, shape index: {}]   ;;  %s1242_s4 = inlined_call_operand.vmem [shape: f32[1,128], index: 4, kind: input, shape index: {}]   ;;  %s1243_s5 = inlined_call_operand.hbm [shape: f32[16,128], index: 5, kind: output, shape index: {}]  }
   0x1   :  { %1256 = sst [smem:[#allocation16_spill]] %s1239_s1 }
   0x2   :  { %10 = vsyncpa [#allocation4], 0 }
   0x3   :  { %11 = vsyncpa [#allocation7], 0 }
   0x4   :  { %12 = vsyncpa [#allocation10], 0 }
   0x5   :  { %13 = vsyncpa [#allocation5], 0 }
   0x6   :  { %15 = vsyncpa [#allocation5 + $0x1], 0  ;;  %s1033_s18 = smov 0   ;;  %s1035_s19 = smov 0  }
   0x7   :  { %s1037_s20 = smov 0   ;;  %s1039_s21 = smov 0  }
   0x8   :  { %s1041_s22 = smov 0   ;;  %s1043_s23 = smov 0  }
   0x9 LB: > { %s994_s24 = smov [#allocation6]   ;;  %s644_s26 = sadd.s32 4294967295, %s992_s23   ;;  %s992_s23 = sphi %s1043_s23, %s21_s23   ;;  %s988_s22 = sphi %s1041_s22, %s1280_s22   ;;  %s984_s21 = sphi %s1039_s21, %s1279_s21   ;;  %s980_s20 = sphi %s1037_s20, %s1278_s20   ;;  %s976_s19 = sphi %s1035_s19, %s1277_s19   ;;  %s972_s18 = sphi %s1033_s18, %s1276_s18  }
   0xa   : > { %s211_s25 = sshll.u32 %s994_s24, 4  ;;  %p646_p0 = scmp.ge.s32.totalorder %s992_s23, 1  ;;  %s212_s25 = int_to_ptr.vmem [resolvable:$true] %s211_s25 }
   0xb   : > { %p1065_p1 = scmp.eq.s32.totalorder %s644_s26, 0  ;;  %p186_p2 = scmp.lt.s32.totalorder %s992_s23, 3 }
   0xc   : > { %s809_s30 = scalar_lea.vmem %s212_s25, 512  ;;  %p817_p10 = scmp.lt.s32.totalorder %s212_s25, %s212_s25 }
   0xd   : > { %s1257_s27 = scalar_select %p1065_p1, 1, 0 }
   0xe   : > { %p1070_p3 = pnand %p646_p0, %p186_p2  ;;  %p810_p7 = scmp.ne.s32.totalorder %s212_s25, %s809_s30 }
   0xf   : > { %p818_p11 = scmp.lt.s32.totalorder %s809_s30, %s809_s30 }
  0x10   : > { %s1258_s28 = scalar_select %p1070_p3, 1, 0 }
  0x11   : > { %p712_p4 = pneg %p1070_p3  ;;  %p819_p12 = por %p818_p11, %p817_p10 }
  0x13   : > { %p1081_p5 = pnand %p712_p4, %p1065_p1 }
  0x15   : > { %s1259_s29 = scalar_select %p1081_p5, 1, 0 }
  0x16   : > { %p1247_p6 = pneg %p1081_p5 }
  0x18   : > { %p812_p8 = pnand %p810_p7, %p1247_p6 }
  0x1a   : > { %p813_p9 = pneg %p812_p8 }
  0x1c   : > { %p820_p13 = pnand %p819_p12, %p813_p9 }
  0x1e   : > { %823 = shalt.err (!%p820_p13)
}
  0x1f   : > { %s1244_s6 = smov 128   ;;  %s1246_s7 = smov 8  }
  0x20   : > { %s1260_s1 = sld [smem:[#allocation16_spill]]  ;;  %s645_s10 = sadd.s32 4294967294, %s992_s23  }
  0x21   : > { %s33_s11 = sadd.s32 1, %s988_s22  ;;  %s40_s12 = sadd.s32 1, %s980_s20 }
  0x22   : > { %p35_p0 = scmp.ge.s32.totalorder %s33_s11, 2  ;;  %p53_p2 = scmp.ne.s32.totalorder %s976_s19, %s972_s18 }
  0x23   : > { %p172_p7 = scmp.ne.s32.totalorder %s980_s20, %s976_s19  ;;  %p173_p9 = scmp.eq.s32.totalorder %s644_s26, 1 }
  0x24   : > { %s1282_s11 = smov (%p35_p0, %s33_s11), 0  ;;  %p1109_p8 = por %p1065_p1, %p53_p2 }
  0x25   : > { %s37_s14 = ssub.s32 %s988_s22, %s1282_s11  ;;  %p179_p10 = scmp.eq.s32.totalorder %s645_s10, 1 }
  0x26   : > { %718 = dma.hbm_to_vmem [thread:$0]  (!%p1081_p5), %s1260_s1, 512, %s212_s25, [#allocation7], %s1244_s6, %s1244_s6, %s1246_s7  }
  0x27   : > { %s1261_s13 = scalar_select %p1109_p8, 1, 0 }
  0x28   : > { %p38_p11 = scmp.eq.s32.totalorder %s37_s14, 0  ;;  %p1115_p12 = por %p173_p9, %p172_p7 }
  0x29   : > { %p1119_p13 = por %p179_p10, %p53_p2  ;;  %s1245_s17 = sshll.u32 %s984_s21, 7 }
  0x2a   : > { %s1262_s15 = scalar_select %p1115_p12, 1, 0 }
  0x2b   : > { %s1263_s16 = scalar_select %p1119_p13, 1, 0 }
  0x2c   : > { %s1125_s24 = scalar_select %p38_p11, %s980_s20, %s40_s12  }
  0x2d   : > { %s199_s8 = scalar_lea.hbm %s1238_s0, %s1245_s17  ;;  %s997_s26 = smov [#allocation3]  }
  0x2e   : > { %s201_s9 = sshll.u32 %s997_s26, 4  ;;  %p1137_p0 = pnand %p712_p4, %p1109_p8  ;;  %s202_s9 = int_to_ptr.vmem [resolvable:$true] %s201_s9 }
  0x2f   : > { %s998_s14 = smov [#allocation8]   ;;  %s824_s12 = scalar_lea.hbm %s199_s8, 128 }
  0x30   : > { %s225_s6 = sshll.u32 %s998_s14, 4  ;;  %p825_p2 = scmp.ne.s32.totalorder %s199_s8, %s824_s12  ;;  %s226_s6 = int_to_ptr.vmem [resolvable:$true] %s225_s6 }
  0x31   : > { %p826_p7 = pneg %p1137_p0  ;;  %s829_s26 = scalar_lea.hbm %s1238_s0, 256 }
  0x32   : > { %p830_p4 = scmp.lt.s32.totalorder %s199_s8, %s1238_s0  ;;  %p831_p11 = scmp.lt.s32.totalorder %s829_s26, %s824_s12 }
  0x33   : > { %p827_p9 = pnand %p826_p7, %p825_p2 }
  0x34   : > { %p832_p6 = por %p831_p11, %p830_p4 }
  0x35   : > { %p828_p10 = pneg %p827_p9 }
  0x37   : > { %p833_p13 = pnand %p832_p6, %p828_p10 }
  0x39   : > { %836 = shalt.err (!%p833_p13)
}
  0x3a   : > { %s837_s1 = scalar_lea.vmem %s202_s9, 128  ;;  %p845_p3 = scmp.lt.s32.totalorder %s202_s9, %s202_s9 }
  0x3b   : > { %p838_p12 = scmp.ne.s32.totalorder %s202_s9, %s837_s1  ;;  %p846_p5 = scmp.lt.s32.totalorder %s837_s1, %s837_s1 }
  0x3d   : > { %p840_p1 = pnand %p838_p12, %p826_p7  ;;  %p847_p2 = por %p846_p5, %p845_p3 }
  0x3f   : > { %p841_p8 = pneg %p840_p1 }
  0x41   : > { %p848_p9 = pnand %p847_p2, %p841_p8 }
  0x43   : > { %851 = shalt.err (!%p848_p9)
}
  0x44   : > { %715 = dma.hbm_to_vmem [thread:$0]  (!%p1137_p0), %s199_s8, 128, %s202_s9, [#allocation4]  }
  0x45   : > { %s863_s7 = scalar_lea.vmem %s226_s6, 64  ;;  %p1265_p11 = scmp.ne.s32.totalorder %s1259_s29, 0 }
  0x46   : > { %p864_p4 = scmp.ne.s32.totalorder %s226_s6, %s863_s7  ;;  %p871_p7 = scmp.lt.s32.totalorder %s226_s6, %s226_s6 }
  0x47   : > { %p1266_p6 = pneg %p1265_p11  ;;  %p872_p12 = scmp.lt.s32.totalorder %s863_s7, %s863_s7 }
  0x49   : > { %p866_p10 = pnand %p864_p4, %p1266_p6  ;;  %p873_p1 = por %p872_p12, %p871_p7 }
  0x4b   : > { %p867_p13 = pneg %p866_p10 }
  0x4d   : > { %p874_p3 = pnand %p873_p1, %p867_p13 }
  0x4f   : > { %877 = shalt.err (!%p874_p3)
}
  0x50   : > { %721 = dma.hbm_to_vmem [thread:$0]  (!%p1265_p11), %s1240_s2, 64, %s226_s6, [#allocation7]  }
  0x51   : > { %s999_s8 = smov [#allocation9]   ;;  %p1267_p8 = pmov %p1266_p6 }
  0x52   : > { %s237_s9 = sshll.u32 %s999_s8, 4  ;;  %s238_s9 = int_to_ptr.vmem [resolvable:$true] %s237_s9 }
  0x53   : > { %s889_s10 = scalar_lea.vmem %s238_s9, 512  ;;  %p897_p9 = scmp.lt.s32.totalorder %s238_s9, %s238_s9 }
  0x54   : > { %p890_p5 = scmp.ne.s32.totalorder %s238_s9, %s889_s10  ;;  %p898_p4 = scmp.lt.s32.totalorder %s889_s10, %s889_s10 }
  0x56   : > { %p892_p0 = pnand %p890_p5, %p1267_p8  ;;  %p899_p6 = por %p898_p4, %p897_p9 }
  0x58   : > { %p893_p2 = pneg %p892_p0 }
  0x5a   : > { %p900_p10 = pnand %p899_p6, %p893_p2 }
  0x5c   : > { %903 = shalt.err (!%p900_p10)
}
  0x5d   : > { %s1268_s14 = smov 8   ;;  %s1269_s12 = smov 128  }
  0x5e   : > { %724 = dma.hbm_to_vmem [thread:$0]  (!%p1265_p11), %s1241_s3, 512, %s238_s9, [#allocation10], %s1269_s12, %s1269_s12, %s1268_s14  }
  0x5f   : > { %p1270_p13 = scmp.ne.s32.totalorder %s1258_s28, 0 }
  0x60   : > { %p1271_p7 = scmp.ne.s32.totalorder (!%p1270_p13), %s1261_s13, 0 }
  0x61   : > { %259 = sbr.rel (%p1270_p13) target bundleno = 883 (0x373), region = 40 }
  0x66   : > { %955 = dma.done.wait (%p1271_p7), [#allocation4], 128  }
  0x67   : > { %957 = vsyncadd (%p1271_p7), [#allocation4], 4294967168  ;;  %p1272_p12 = scmp.ne.s32.totalorder %s1257_s27, 0 }
  0x69   : > { %959 = dma.done.wait (%p1272_p12), [#allocation7], 576  }
  0x6a   : > { %961 = vsyncadd (%p1272_p12), [#allocation7], 4294966720 }
  0x6b   : > { %963 = dma.done.wait (%p1272_p12), [#allocation10], 512  }
  0x6c   : > { %965 = vsyncadd (%p1272_p12), [#allocation10], 4294966784  ;;  %v1000_v0 = vmov 0.0   ;;  %vm1001_vm0 = vmmov 0   ;;  %v309_v1 = vld [vmem:[#allocation6 + $0x18] sm:$0xff]  ;;  %v308_v2 = vld [vmem:[#allocation6 + $0x10] sm:$0xff]  ;;  %v310_v6 = vlaneseq }
  0x6d   : > { %674 = vmatprep.subr.mxu0 %v1000_v0  ;;  %682 = vmatprep.mubr.msk.f32.mxu0 %vm1001_vm0, %v1000_v0  ;;  %v307_v3 = vld [vmem:[#allocation6 + $0x8] sm:$0xff]  ;;  %v306_v4 = vld [vmem:[#allocation6] sm:$0xff]  ;;  %v305_v5 = vld [vmem:[#allocation3] sm:$0xff]  ;;  %vm314_vm1 = vcmask 261120   ;;  %s294_s27 = sand.u32 1, %s976_s19   ;;  %s1273_s7 = sshll.u32 %s984_s21, 7 }
  0x6e   : > { %685 = vmatprep.subr.mxu1 %v1000_v0  ;;  %693 = vmatprep.mubr.msk.f32.mxu1 %vm1001_vm0, %v1000_v0  ;;  %v311_v7 = vshrl.u32 %v310_v6, 7  ;;  %v304_v9 = vld [vmem:[#allocation8] sm:$0x7]  ;;  %v432_v30 = vld [vmem:[#allocation9 + $0x10] sm:$0xff]  ;;  %v431_v31 = vld [vmem:[#allocation9 + $0x8] sm:$0xff]  ;;  %s656_s28 = sshll.u32 %s294_s27, 3  ;;  %s1198_s8 = scalar_lea.hbm %s1243_s5, %s1273_s7 }
  0x6f   : > { %675 = vmatpush3.msra.mxu0 %v309_v1  ;;  %v433_v29 = vld [vmem:[#allocation9 + $0x18] sm:$0xff]  ;;  %v430_v32 = vld [vmem:[#allocation9] sm:$0xff]  ;;  %v658_v50 = vld [vmem:[%s1242_s4] ss:$0 sm:$0xff]  ;;  %s296_s30 = scalar_lea.vmem [#allocation11], %s656_s28  ;;  %s517_s9 = scalar_lea.sflag [#allocation5], %s294_s27 }
  0x70   : > { %676 = vmatprep.subr.mxu0 %v1000_v0  ;;  %v312_v8 = vsub.s32 0, %v311_v7  ;;  %686 = vmatpush3.msra.mxu1 %v433_v29  ;;  %v420_v41 = vsub.s32 1, %v311_v7  ;;  %v425_v42 = vsub.s32 2, %v311_v7  ;;  %s531_s26 = sshll.u32 %s296_s30, 4  ;;  %p1274_p1 = scmp.ne.s32.totalorder %s1262_s15, 0  ;;  %s532_s26 = int_to_ptr.vmem [resolvable:$true] %s531_s26 }
  0x71   : > { %677 = vmatpush3.msra.mxu0 %v308_v2  ;;  %687 = vmatprep.subr.mxu1 %v1000_v0  ;;  %s904_s10 = scalar_lea.vmem %s532_s26, 128  ;;  %s1002_s14 = smov [#allocation11]  }
  0x72   : > { %678 = vmatprep.subr.mxu0 %v1000_v0  ;;  %v313_v10 = vrot.slane %v304_v9, %v312_v8  ;;  %688 = vmatpush3.msra.mxu1 %v432_v30  ;;  %v421_v43 = vrot.slane %v304_v9, %v420_v41  ;;  %v426_v45 = vrot.slane %v304_v9, %v425_v42  ;;  %p905_p11 = scmp.ne.s32.totalorder %s532_s26, %s904_s10  ;;  %s908_s12 = sshll.u32 %s1002_s14, 4  ;;  %s909_s12 = int_to_ptr.vmem [resolvable:$false] %s908_s12 }
  0x73   : > { %679 = vmatpush3.msra.mxu0 %v307_v3  ;;  %689 = vmatprep.subr.mxu1 %v1000_v0  ;;  %s910_s6 = scalar_lea.vmem %s909_s12, 256  ;;  %p911_p8 = scmp.lt.s32.totalorder %s532_s26, %s909_s12 }
  0x74   : > { %680 = vmatprep.subr.mxu0 %v1000_v0  ;;  %690 = vmatpush3.msra.mxu1 %v431_v31  ;;  %p906_p3 = pnand %p905_p11, %p1274_p1  ;;  %p912_p0 = scmp.lt.s32.totalorder %s910_s6, %s904_s10 }
  0x75   : > { %681 = vmatpush3.msra.mxu0 %v306_v4  ;;  %691 = vmatprep.subr.mxu1 %v1000_v0 }
  0x76   : > { %683 = vmatmul.mubr.msk.f32.vlgmr.msra.gmra.mxu0 %vm314_vm1, %v305_v5  ;;  %692 = vmatpush3.msra.mxu1 %v430_v32  ;;  %p907_p5 = pneg %p906_p3  ;;  %p913_p2 = por %p912_p0, %p911_p8 }
  0x78   : > { %p914_p9 = pnand %p913_p2, %p907_p5 }
 0x136   : > { %v384_v11 = vpop.f32.mrf.mxu0 }
 0x137   : > { %v385_v12 = vadd.f32 %v384_v11, %v313_v10 }
 0x138   : > { %v684_v13 = vpop.f32.mrf.mxu0 }
 0x139   : > { %v389_v14 = vmul.f32 0.044715, %v385_v12  ;;  %v388_v20 = vmul.f32 0.5, %v385_v12 }
 0x13b   : > { %v390_v15 = vmul.f32 %v389_v14, %v385_v12 }
 0x13d   : > { %v391_v16 = vmul.f32 %v390_v15, %v385_v12 }
 0x13f   : > { %v392_v17 = vadd.f32 %v391_v16, %v385_v12 }
 0x141   : > { %v393_v18 = vmul.f32 0.7978846, %v392_v17 }
 0x143   : > { %792 = vtanh.f32 %v393_v18 }
 0x150   : > { %v793_v19 = vpop.eup %792 }
 0x151   : > { %v395_v21 = vadd.f32 1.0, %v793_v19 }
 0x153   : > { %v396_v22 = vmul.f32 %v395_v21, %v388_v20 }
 0x155   : > { %v397_v23 = vsel %vm314_vm1, %v396_v22, 0.0 }
 0x156   : > { %398 = vadd.xlane.f32.xlu0 %v397_v23 }
 0x1df   : > { %v399_v24 = vpop.xlane.xlu0 %398 }
 0x1e0   : > { %v401_v25 = vmul.f32 0.03125, %v399_v24 }
 0x1e2   : > { %v402_v26 = vsub.f32 %v396_v22, %v401_v25 }
 0x1e4   : > { %v403_v27 = vmul.f32 %v402_v26, %v402_v26 }
 0x1e6   : > { %v404_v28 = vsel %vm314_vm1, %v403_v27, 0.0 }
 0x1e7   : > { %405 = vadd.xlane.f32.xlu0 %v404_v28 }
 0x270   : > { %v406_v33 = vpop.xlane.xlu0 %405 }
 0x271   : > { %v407_v34 = vmul.f32 0.03125, %v406_v33 }
 0x273   : > { %v408_v35 = vadd.f32 1e-12, %v407_v34 }
 0x275   : > { %794 = vrsqrt.f32 %v408_v35  ;;  %vm411_vm2 = vcmp.eq.f32.partialorder %v408_v35, inf  ;;  %v414_v38 = vand.u32 2147483648, %v408_v35  ;;  %vm413_vm3 = vcmp.eq.f32.partialorder %v408_v35, 0.0 }
 0x282   : > { %v795_v36 = vpop.eup %794 }
 0x283   : > { %v410_v37 = vmul.f32 %v795_v36, %v408_v35 }
 0x285   : > { %v412_v39 = vsel %vm411_vm2, %v408_v35, %v410_v37 }
 0x286   : > { %v415_v40 = vsel %vm413_vm3, %v414_v38, %v412_v39 }
 0x287   : > { %796 = vrcp.f32 %v415_v40 }
 0x294   : > { %v797_v44 = vpop.eup %796 }
 0x295   : > { %v417_v46 = vmul.f32 %v797_v44, %v402_v26 }
 0x297   : > { %v422_v47 = vmul.f32 %v421_v43, %v417_v46 }
 0x299   : > { %v427_v48 = vadd.f32 %v426_v45, %v422_v47 }
 0x29b   : > { %428 = vst.msk [vmem:[#allocation2] sm:$0xff] %vm314_vm1, %v427_v48 }
 0x2a2   : > { %v429_v49 = vld [vmem:[#allocation2] sm:$0xff] }
 0x2a3   : > { %694 = vmatmul.mubr.msk.f32.vlgmr.msra.gmra.mxu1 %vm314_vm1, %v429_v49 }
 0x363   : > { %v511_v51 = vpop.f32.mrf.mxu1 }
 0x364   : > { %v512_v52 = vadd.f32 %v658_v50, %v511_v51 }
 0x365   : > { %v695_v53 = vpop.f32.mrf.mxu1 }
 0x366   : > { %515 = vst [vmem:[%s296_s30] sm:$0xff] %v512_v52 }
 0x367   : > { %917 = shalt.err (!%p914_p9)
}
 0x368   : > { %s918_s21 = scalar_lea.hbm %s1198_s8, 128  ;;  %s922_s28 = scalar_lea.hbm %s1243_s5, 256 }
 0x369   : > { %p919_p4 = scmp.ne.s32.totalorder %s1198_s8, %s918_s21  ;;  %p923_p13 = scmp.lt.s32.totalorder %s1198_s8, %s1243_s5 }
 0x36a   : > { %p924_p7 = scmp.lt.s32.totalorder %s922_s28, %s918_s21 }
 0x36b   : > { %p920_p6 = pnand %p919_p4, %p1274_p1 }
 0x36c   : > { %p925_p12 = por %p924_p7, %p923_p13 }
 0x36d   : > { %p921_p10 = pneg %p920_p6 }
 0x36f   : > { %p926_p11 = pnand %p925_p12, %p921_p10 }
 0x371   : > { %929 = shalt.err (!%p926_p11)
}
 0x372   : > { %710 = dma.vmem_to_hbm [thread:$0]  (%p1274_p1), %s532_s26, 128, %s1198_s8, %s517_s9  }
 0x373 PF: > { %p735_p3 = scmp.ge.s32.totalorder %s992_s23, 2  ;;  %s543_s30 = sand.u32 1, %s972_s18  }
 0x374   : > { %p1275_p5 = scmp.ne.s32.totalorder %s1263_s16, 0  ;;  %s544_s7 = scalar_lea.sflag [#allocation5], %s543_s30 }
 0x376   : > { %p726_p8 = pnand %p735_p3, %p1275_p5 }
 0x378   : > { %p727_p0 = pneg %p726_p8 }
 0x37a   : > { %967 = dma.done.wait (%p727_p0), %s544_s7, 128  }
 0x37b   : > { %969 = vsyncadd (%p727_p0), %s544_s7, 4294967168  ;;  %s21_s23 = sadd.s32 1, %s992_s23   ;;  %s1276_s18 = smov %s976_s19 }
 0x37c   : > { %p18_p2 = scmp.ge.s32.totalorder %s21_s23, 4   ;;  %s1277_s19 = smov %s980_s20 }
 0x37d   : > { %s1278_s20 = smov %s1125_s24  ;;  %s1279_s21 = smov %s988_s22 }
 0x37e   : > { %s1280_s22 = smov %s1282_s11  ;;  %20 = sbr.rel (!%p18_p2) target bundleno = 9 (0x9), region = 98 }
 0x383   :  { %549 = vsyncpa [#allocation4], 1 }
 0x384   :  { %551 = vsyncpa [#allocation4 + $0x1], 1 }
 0x385   :  { %552 = vsyncpa [#allocation7], 1 }
 0x386   :  { %553 = vsyncpa [#allocation10], 1 }
 0x387   :  { %554 = vsyncpa [#allocation5], 1 }
 0x388   :  { %556 = vsyncpa [#allocation5 + $0x1], 1 }

</bundles_post_ra>
